<compile_context>
chip_gen: v6e
topology: v6e:2x2x1
jax: 0.10.0
libtpu: 0.0.40
codegen_flags: <defaults>
</compile_context>

<pallas_src>
import math
import jax
import jax.numpy as jnp
from jax.experimental import pallas as pl
from jax.experimental.pallas import tpu as pltpu


def build_pos_enc(max_len: int, d_model: int) -> jnp.ndarray:
    """Sin/cos positional encoding table, identical to the PyTorch build_pos_enc."""
    position = jnp.arange(0, max_len, dtype=jnp.float32)[:, None]            # (L, 1)
    div_term = jnp.exp(
        jnp.arange(0, d_model, 2, dtype=jnp.float32) * (-math.log(10000.0) / d_model)
    )                                                                         # (D/2,)
    ang = position * div_term                                                 # (L, D/2)
    # interleave: pe[:, 0::2] = sin, pe[:, 1::2] = cos
    pe = jnp.stack([jnp.sin(ang), jnp.cos(ang)], axis=-1).reshape(max_len, d_model)
    return pe


def _pae_kernel(x_ref, pe_ref, w_ref, o_ref):
    # x_ref: (rows_tile, L) tile of packed rows
    # pe_ref: (rows_tile, L) precomputed pe@Wpe.T+b pattern for this tile
    # w_ref: (L, L) block-diagonal kron(I_p, Wx.T)      (grid-invariant)
    o_ref[...] = (
        jnp.dot(x_ref[...], w_ref[...], preferred_element_type=jnp.float32)
        + pe_ref[...]
    ).astype(o_ref.dtype)


def _vmem_capacity_bytes() -> int:
    try:
        info = pltpu.get_tpu_info()
        cap = getattr(info, "vmem_capacity_bytes", None)
        if cap:
            return int(cap)
    except Exception:
        pass
    return 64 * 1024 * 1024  # v7x has the smallest per-TensorCore VMEM


def _plan_tiles(num_a, tv, bytes_per_row, w_bytes, budget, target):
    """Pick tiling mode and size: returns ("A", agents_per_tile) or ("T", time_rows_per_tile).

    Footprint model: 2 x-bufs + 2 out-bufs + 2 pe-bufs (each rows_tile rows) + 2 weight bufs.
    """
    def footprint(rows_tile):
        return 6 * rows_tile * bytes_per_row + 2 * w_bytes

    total_rows = num_a * tv
    # Tiny problem: one grid step; nothing to pipeline or megacore-balance.
    if total_rows * bytes_per_row <= 4 * 2**20 and footprint(total_rows) <= budget:
        return "A", num_a

    if tv * bytes_per_row >= 2 * 2**20:
        # T-mode: split the packed-time axis within each agent.
        cands = sorted({c for c in range(8, tv + 1, 8) if tv % c == 0} | {tv})
        ok = [c for c in cands if footprint(c) <= budget] or [min(cands)]
        under = [c for c in ok if c * bytes_per_row <= target] or [min(ok)]
        best = max(under)
        evens = [c for c in under
                 if ((tv // c) * num_a) % 2 == 0 and 2 * c >= best]
        return "T", (max(evens) if evens else best)

    # A-mode: whole agents per tile.
    cands = [t for t in range(1, num_a + 1)
             if num_a % t == 0 and ((t * tv) % 8 == 0 or t == num_a)]
    ok = [t for t in cands if footprint(t * tv) <= budget] or [min(cands)]
    under = [t for t in ok if t * tv * bytes_per_row <= target] or [min(ok)]
    best = max(under)
    evens = [t for t in under if (num_a // t) % 2 == 0 and 2 * t >= best]
    return "A", (max(evens) if evens else best)


def positional_agent_encoding(x, num_a, pe_table, fc_weight, fc_bias, t_offset=0):
    """
    x:         (num_a, num_t, d_model) float32
    pe_table:  (max_t_len, d_model)    float32
    fc_weight: (d_model, 2*d_model)    float32   (PyTorch Linear layout)
    fc_bias:   (d_model,)              float32
    returns:   (num_a, num_t, d_model) float32
    """
    a, num_t, d = x.shape
    assert a == num_a
    max_t_len = pe_table.shape[0]
    if t_offset < 0 or t_offset + num_t > max_t_len:
        raise ValueError(
            f"t_offset ({t_offset}) + num_t ({num_t}) exceeds max_t_len ({max_t_len})")

    # --- split the weight along the contraction axis --------------------------
    wx_t = fc_weight[:, :d].T                                  # (d, d)
    wpe_t = fc_weight[:, d:].T                                 # (d, d)
    pe_slice = jax.lax.dynamic_slice(pe_table, (t_offset, 0), (num_t, d))
    pe_proj = (jnp.dot(pe_slice, wpe_t, precision=jax.lax.Precision.HIGHEST)
               + fc_bias[None, :])                             # (num_t, d), done once

    # --- lane-dense packing / padding ------------------------------------------
    if d <= 128 and 128 % d == 0 and num_t % (128 // d) == 0:
        p, pad = 128 // d, 0                  # pack p time steps per 128-lane row
    elif d % 128 == 0:
        p, pad = 1, 0                         # already lane-dense
    else:
        p, pad = 1, (-d) % 128                # zero-pad lanes to a 128 multiple
    L = p * d + pad

    w_blk = wx_t if p == 1 else jnp.kron(jnp.eye(p, dtype=x.dtype), wx_t)
    x_work, pe_work = x, pe_proj
    if pad:
        x_work = jnp.pad(x, ((0, 0), (0, 0), (0, pad)))
        w_blk = jnp.pad(w_blk, ((0, pad), (0, pad)))
        pe_work = jnp.pad(pe_proj, ((0, 0), (0, pad)))

    tv = num_t // p                 # packed rows per agent
    rows = num_a * tv
    pe_view = pe_work.reshape(tv, L)

    # --- VMEM-aware tile planning ----------------------------------------------
    bpr = L * 4                     # bytes per packed row (f32)
    w_bytes = L * L * 4
    cap = _vmem_capacity_bytes()
    budget = min(26 * 2**20, int(cap * 0.4))
    target = 4 * 2**20              # per-tile target (HBM-bound: big steps win)
    mode, val = _plan_tiles(num_a, tv, bpr, w_bytes, budget, target)
    rows_tile = (val * tv) if mode == "A" else val
    fp = 6 * rows_tile * bpr + 2 * w_bytes
    vmem_limit = int(min(max(32 * 2**20, fp + 8 * 2**20), max(int(cap * 0.75), 32 * 2**20)))
    vmem_limit = max(vmem_limit, 16 * 2**20)

    if mode == "T":
        tc = val
        x3 = x_work.reshape(num_a, tv, L)
        grid = (tv // tc, num_a)    # agents innermost -> pe block re-DMA'd once/chunk
        out = pl.pallas_call(
            _pae_kernel,
            out_shape=jax.ShapeDtypeStruct((num_a, tv, L), x.dtype),
            grid_spec=pltpu.PrefetchScalarGridSpec(
                num_scalar_prefetch=0,
                grid=grid,
                in_specs=[
                    pl.BlockSpec((None, tc, L), lambda jt, ai: (ai, jt, 0)),   # x rows
                    pl.BlockSpec((tc, L), lambda jt, ai: (jt, 0)),             # pe chunk
                    pl.BlockSpec((L, L), lambda jt, ai: (0, 0)),               # weight
                ],
                out_specs=pl.BlockSpec((None, tc, L), lambda jt, ai: (ai, jt, 0)),
            ),
            compiler_params=pltpu.CompilerParams(
                dimension_semantics=("parallel", "parallel"),
                vmem_limit_bytes=vmem_limit,
            ),
        )(x3, pe_view, w_blk)
    else:
        ta = val
        x2 = x_work.reshape(rows, L)
        pe_tile = jnp.tile(pe_view, (ta, 1))          # (rows_tile, L), fixed block
        grid = (num_a // ta,)
        out = pl.pallas_call(
            _pae_kernel,
            out_shape=jax.ShapeDtypeStruct((rows, L), x.dtype),
            grid_spec=pltpu.PrefetchScalarGridSpec(
                num_scalar_prefetch=0,
                grid=grid,
                in_specs=[
                    pl.BlockSpec((rows_tile, L), lambda i: (i, 0)),   # x rows
                    pl.BlockSpec((rows_tile, L), lambda i: (0, 0)),   # pe tile (invariant)
                    pl.BlockSpec((L, L), lambda i: (0, 0)),           # weight (invariant)
                ],
                out_specs=pl.BlockSpec((rows_tile, L), lambda i: (i, 0)),
            ),
            compiler_params=pltpu.CompilerParams(
                dimension_semantics=("parallel",),
                vmem_limit_bytes=vmem_limit,
            ),
        )(x2, pe_tile, w_blk)

    # Undo packing / padding: (…, L) -> (num_a, num_t, L/p) -> slice to d.
    return out.reshape(num_a, num_t, -1)[..., :d]


if __name__ == "__main__":
    key = jax.random.PRNGKey(0)
    d_model = 32
    num_a = 8       # agents (dancers)
    num_t = 8       # time steps
    max_t_len = 200
    t_offset = 0

    k_x, k_w, k_b = jax.random.split(key, 3)
    x = jax.random.normal(k_x, (num_a, num_t, d_model), dtype=jnp.float32)

    # Deterministic Linear(2*d_model, d_model) init (uniform, PyTorch-style bound).
    bound = 1.0 / math.sqrt(2 * d_model)
    fc_weight = jax.random.uniform(k_w, (d_model, 2 * d_model),
                                   minval=-bound, maxval=bound, dtype=jnp.float32)
    fc_bias = jax.random.uniform(k_b, (d_model,),
                                 minval=-bound, maxval=bound, dtype=jnp.float32)

    pe_table = build_pos_enc(max_t_len, d_model)

    out = positional_agent_encoding(x, num_a, pe_table, fc_weight, fc_bias,
                                    t_offset=t_offset)
    out = jax.block_until_ready(out)

    # Pure-JAX reference (eval mode: dropout is identity).
    pe_ref = jnp.broadcast_to(
        pe_table[t_offset:t_offset + num_t][None], (num_a, num_t, d_model))
    ref = jnp.concatenate([x, pe_ref], axis=-1) @ fc_weight.T + fc_bias
    assert jnp.allclose(out, ref, atol=1e-5, rtol=1e-5)

    print("KERNEL_OK")
</pallas_src>

<mosaic_0001>
module attributes {stable_mosaic.version = 11 : i64} {
  func.func @_pae_kernel(%arg0: i32, %arg1: memref<16x128xf32, #tpu.memory_space<vmem>>, %arg2: memref<16x128xf32, #tpu.memory_space<vmem>>, %arg3: memref<128x128xf32, #tpu.memory_space<vmem>>, %arg4: memref<16x128xf32, #tpu.memory_space<vmem>>) attributes {dimension_semantics = [#tpu.dimension_semantics<parallel>], iteration_bounds = array<i64: 1>, scalar_prefetch = 0 : i64, scratch_operands = 0 : i64, tpu.core_type = #tpu.core_type<tc>, window_params = [{transform_indices = @transform_0, window_bounds = array<i64: 16, 128>}, {pipeline_mode = #tpu.pipeline_mode<synchronous>, transform_indices = @transform_1, window_bounds = array<i64: 16, 128>}, {pipeline_mode = #tpu.pipeline_mode<synchronous>, transform_indices = @transform_2, window_bounds = array<i64: 128, 128>}, {transform_indices = @transform_3, window_bounds = array<i64: 16, 128>}]} {
    %c0 = arith.constant 0 : index
    %c0_0 = arith.constant 0 : index
    %0 = vector.load %arg1[%c0, %c0_0] : memref<16x128xf32, #tpu.memory_space<vmem>>, vector<16x128xf32>
    %c0_1 = arith.constant 0 : index
    %c0_2 = arith.constant 0 : index
    %1 = vector.load %arg3[%c0_1, %c0_2] : memref<128x128xf32, #tpu.memory_space<vmem>>, vector<128x128xf32>
    %cst = arith.constant dense<0.000000e+00> : vector<16x128xf32>
    %2 = tpu.matmul %0, %1, %cst {dimension_numbers = #tpu.dot_dimension_numbers<[1], [0], [0], [1], [0, 0, 1, 1], [], []>} : vector<16x128xf32>, vector<128x128xf32>, vector<16x128xf32> -> vector<16x128xf32>
    %c0_3 = arith.constant 0 : index
    %c0_4 = arith.constant 0 : index
    %3 = vector.load %arg2[%c0_3, %c0_4] : memref<16x128xf32, #tpu.memory_space<vmem>>, vector<16x128xf32>
    %4 = arith.addf %2, %3 : vector<16x128xf32>
    %c0_5 = arith.constant 0 : index
    %c0_6 = arith.constant 0 : index
    %5 = vector.load %arg4[%c0_5, %c0_6] : memref<16x128xf32, #tpu.memory_space<vmem>>, vector<16x128xf32>
    tpu.vector_store %arg4[%c0_5, %c0_6], %4 {strides = array<i32>} : memref<16x128xf32, #tpu.memory_space<vmem>>, vector<16x128xf32>,
    return
  }
  func.func @transform_0(%arg0: i32) -> (i32, i32) {
    %c0_i32 = arith.constant 0 : i32
    %c0_i32_0 = arith.constant 0 : i32
    return %arg0, %c0_i32 : i32, i32
  }
  func.func @transform_1(%arg0: i32) -> (i32, i32) {
    %c0_i32 = arith.constant 0 : i32
    %c0_i32_0 = arith.constant 0 : i32
    %c0_i32_1 = arith.constant 0 : i32
    return %c0_i32, %c0_i32_0 : i32, i32
  }
  func.func @transform_2(%arg0: i32) -> (i32, i32) {
    %c0_i32 = arith.constant 0 : i32
    %c0_i32_0 = arith.constant 0 : i32
    %c0_i32_1 = arith.constant 0 : i32
    return %c0_i32, %c0_i32_0 : i32, i32
  }
  func.func @transform_3(%arg0: i32) -> (i32, i32) {
    %c0_i32 = arith.constant 0 : i32
    %c0_i32_0 = arith.constant 0 : i32
    return %arg0, %c0_i32 : i32, i32
  }
}

</mosaic_0001>

<bundles_post_ra>
// kernel: tpu_custom_call.1
= control target key start
LH: loop header
LB: loop body
LE: loop exit
PB: predicated region body
PF: predicated region fallthrough
CT: control target
= control target key end

     0   :  { %8 = vsyncpa [#allocation3], 0  ;;  %s366_s0 = inlined_call_operand.hbm [shape: f32[16,128], index: 0, kind: input, shape index: {}]   ;;  %s367_s1 = inlined_call_operand.hbm [shape: f32[16,128], index: 1, kind: input, shape index: {}]   ;;  %s368_s2 = inlined_call_operand.hbm [shape: f32[128,128], index: 2, kind: input, shape index: {}]   ;;  %s369_s3 = inlined_call_operand.hbm [shape: f32[16,128], index: 3, kind: output, shape index: {}]  }
   0x1   :  { %9 = vsyncpa [#allocation6], 0 }
   0x2   :  { %10 = vsyncpa [#allocation4], 0  ;;  %s316_s12 = smov [#allocation5]   ;;  %s317_s14 = smov [#allocation2]  }
   0x3   :  { %s28_s13 = sshll.u32 %s316_s12, 4  ;;  %s16_s15 = sshll.u32 %s317_s14, 4  ;;  %s29_s13 = int_to_ptr.vmem [resolvable:$true] %s28_s13  ;;  %s17_s15 = int_to_ptr.vmem [resolvable:$true] %s16_s15 }
   0x4   :  { %s238_s16 = scalar_lea.vmem %s29_s13, 256  ;;  %p243_p1 = scmp.lt.s32.totalorder %s29_s13, %s29_s13 }
   0x5   :  { %p239_p0 = scmp.ne.s32.totalorder %s29_s13, %s238_s16  ;;  %p244_p2 = scmp.lt.s32.totalorder %s238_s16, %s238_s16 }
   0x7   :  { %p245_p3 = por %p244_p2, %p243_p1 }
   0x9   :  { %p246_p4 = pnand %p245_p3, %p239_p0 }
   0xb   :  { %249 = shalt.err (!%p246_p4)
}
   0xc   :  { %s318_s17 = smov 128   ;;  %s319_s18 = smov 8  }
   0xd   :  { %34 = dma.hbm_to_vmem [thread:$0]  %s367_s1, 256, %s29_s13, [#allocation6], %s318_s17, %s318_s17, %s319_s18  }
   0xe   :  { %s258_s21 = scalar_lea.vmem %s17_s15, 256  ;;  %p263_p6 = scmp.lt.s32.totalorder %s17_s15, %s17_s15 }
   0xf   :  { %p259_p5 = scmp.ne.s32.totalorder %s17_s15, %s258_s21  ;;  %p264_p7 = scmp.lt.s32.totalorder %s258_s21, %s258_s21 }
  0x11   :  { %p265_p8 = por %p264_p7, %p263_p6 }
  0x13   :  { %p266_p9 = pnand %p265_p8, %p259_p5 }
  0x15   :  { %269 = shalt.err (!%p266_p9)
}
  0x16   :  { %22 = dma.hbm_to_vmem [thread:$0]  %s366_s0, 256, %s17_s15, [#allocation3], %s318_s17, %s318_s17, %s319_s18  }
  0x17   :  { %s320_s24 = smov [#allocation7]  }
  0x18   :  { %s40_s25 = sshll.u32 %s320_s24, 4  ;;  %s41_s25 = int_to_ptr.vmem [resolvable:$true] %s40_s25 }
  0x19   :  { %s278_s26 = scalar_lea.vmem %s41_s25, 2048  ;;  %p283_p11 = scmp.lt.s32.totalorder %s41_s25, %s41_s25 }
  0x1a   :  { %p279_p10 = scmp.ne.s32.totalorder %s41_s25, %s278_s26  ;;  %p284_p12 = scmp.lt.s32.totalorder %s278_s26, %s278_s26 }
  0x1c   :  { %p285_p13 = por %p284_p12, %p283_p11 }
  0x1e   :  { %p286_p0 = pnand %p285_p13, %p279_p10 }
  0x20   :  { %289 = shalt.err (!%p286_p0)
}
  0x21   :  { %46 = dma.hbm_to_vmem [thread:$0]  %s368_s2, 2048, %s41_s25, [#allocation6], %s318_s17, %s318_s17, %s319_s18  }
  0x22   :  { %310 = dma.done.wait [#allocation3], 256  }
  0x23   :  { %311 = vsyncadd [#allocation3], 4294967040 }
  0x24   :  { %312 = dma.done.wait [#allocation6], 2304  }
  0x25   :  { %313 = vsyncadd [#allocation6], 4294964992  ;;  %v73_v0 = vld [vmem:[#allocation7 + $0x78] sm:$0xff]  ;;  %v72_v1 = vld [vmem:[#allocation7 + $0x70] sm:$0xff]  ;;  %s321_s0 = smov [#allocation8]  }
  0x26   :  { %189 = vmatprep.subr.mxu0 %v73_v0  ;;  %v71_v2 = vld [vmem:[#allocation7 + $0x68] sm:$0xff]  ;;  %v70_v3 = vld [vmem:[#allocation7 + $0x60] sm:$0xff]  ;;  %v69_v5 = vld [vmem:[#allocation7 + $0x58] sm:$0xff]  ;;  %s158_s2 = sshll.u32 %s321_s0, 4  ;;  %s159_s2 = int_to_ptr.vmem [resolvable:$true] %s158_s2 }
  0x27   :  { %190 = vmatpush3.msra.mxu0 %v73_v0  ;;  %v56_v4 = vld [vmem:[#allocation2] sm:$0xff]  ;;  %v68_v6 = vld [vmem:[#allocation7 + $0x50] sm:$0xff]  ;;  %v67_v7 = vld [vmem:[#allocation7 + $0x48] sm:$0xff]  ;;  %s290_s28 = scalar_lea.vmem %s159_s2, 256  ;;  %p295_p2 = scmp.lt.s32.totalorder %s159_s2, %s159_s2 }
  0x28   :  { %191 = vmatprep.subr.mxu0 %v72_v1  ;;  %221 = vmatprep.mubr.f32.mxu0 %v56_v4  ;;  %v66_v8 = vld [vmem:[#allocation7 + $0x40] sm:$0xff]  ;;  %v65_v9 = vld [vmem:[#allocation7 + $0x38] sm:$0xff]  ;;  %v64_v10 = vld [vmem:[#allocation7 + $0x30] sm:$0xff]  ;;  %p291_p1 = scmp.ne.s32.totalorder %s159_s2, %s290_s28  ;;  %p296_p3 = scmp.lt.s32.totalorder %s290_s28, %s290_s28 }
  0x29   :  { %192 = vmatpush3.msra.mxu0 %v72_v1  ;;  %v63_v11 = vld [vmem:[#allocation7 + $0x28] sm:$0xff]  ;;  %v62_v12 = vld [vmem:[#allocation7 + $0x20] sm:$0xff]  ;;  %v61_v13 = vld [vmem:[#allocation7 + $0x18] sm:$0xff] }
  0x2a   :  { %193 = vmatprep.subr.mxu0 %v71_v2  ;;  %v60_v14 = vld [vmem:[#allocation7 + $0x10] sm:$0xff]  ;;  %v59_v15 = vld [vmem:[#allocation7 + $0x8] sm:$0xff]  ;;  %v58_v16 = vld [vmem:[#allocation7] sm:$0xff]  ;;  %p297_p4 = por %p296_p3, %p295_p2 }
  0x2b   :  { %194 = vmatpush3.msra.mxu0 %v71_v2  ;;  %v57_v17 = vld [vmem:[#allocation2 + $0x8] sm:$0xff]  ;;  %v75_v18 = vld [vmem:[#allocation5 + $0x8] sm:$0xff]  ;;  %v74_v20 = vld [vmem:[#allocation5] sm:$0xff] }
  0x2c   :  { %195 = vmatprep.subr.mxu0 %v70_v3  ;;  %p298_p5 = pnand %p297_p4, %p291_p1 }
  0x2d   :  { %196 = vmatpush3.msra.mxu0 %v70_v3 }
  0x2e   :  { %197 = vmatprep.subr.mxu0 %v69_v5 }
  0x2f   :  { %198 = vmatpush3.msra.mxu0 %v69_v5 }
  0x30   :  { %199 = vmatprep.subr.mxu0 %v68_v6 }
  0x31   :  { %200 = vmatpush3.msra.mxu0 %v68_v6 }
  0x32   :  { %201 = vmatprep.subr.mxu0 %v67_v7 }
  0x33   :  { %202 = vmatpush3.msra.mxu0 %v67_v7 }
  0x34   :  { %203 = vmatprep.subr.mxu0 %v66_v8 }
  0x35   :  { %204 = vmatpush3.msra.mxu0 %v66_v8 }
  0x36   :  { %205 = vmatprep.subr.mxu0 %v65_v9 }
  0x37   :  { %206 = vmatpush3.msra.mxu0 %v65_v9 }
  0x38   :  { %207 = vmatprep.subr.mxu0 %v64_v10 }
  0x39   :  { %208 = vmatpush3.msra.mxu0 %v64_v10 }
  0x3a   :  { %209 = vmatprep.subr.mxu0 %v63_v11 }
  0x3b   :  { %210 = vmatpush3.msra.mxu0 %v63_v11 }
  0x3c   :  { %211 = vmatprep.subr.mxu0 %v62_v12 }
  0x3d   :  { %212 = vmatpush3.msra.mxu0 %v62_v12 }
  0x3e   :  { %213 = vmatprep.subr.mxu0 %v61_v13 }
  0x3f   :  { %214 = vmatpush3.msra.mxu0 %v61_v13 }
  0x40   :  { %215 = vmatprep.subr.mxu0 %v60_v14 }
  0x41   :  { %216 = vmatpush3.msra.mxu0 %v60_v14 }
  0x42   :  { %217 = vmatprep.subr.mxu0 %v59_v15 }
  0x43   :  { %218 = vmatpush3.msra.mxu0 %v59_v15 }
  0x44   :  { %219 = vmatprep.subr.mxu0 %v58_v16 }
  0x45   :  { %220 = vmatpush3.msra.mxu0 %v58_v16 }
  0x46   :  { %222 = vmatmul.mubr.f32.vlgmr.msra.gmra.mxu0 %v57_v17 }
 0x106   :  { %v223_v19 = vpop.f32.mrf.mxu0 }
 0x107   :  { %v148_v21 = vadd.f32 %v223_v19, %v75_v18 }
 0x108   :  { %v142_v22 = vpop.f32.mrf.mxu0 }
 0x109   :  { %152 = vst [vmem:[#allocation8 + $0x8] sm:$0xff] %v148_v21  ;;  %v143_v23 = vadd.f32 %v142_v22, %v74_v20 }
 0x10b   :  { %151 = vst [vmem:[#allocation8] sm:$0xff] %v143_v23 }
 0x10c   :  { %301 = shalt.err (!%p298_p5)
}
 0x10d   :  { %164 = dma.vmem_to_hbm [thread:$0]  %s159_s2, 256, %s369_s3, [#allocation4], %s318_s17, %s318_s17, %s319_s18  }
 0x10e   :  { %314 = dma.done.wait [#allocation4], 256  }
 0x10f   :  { %315 = vsyncadd [#allocation4], 4294967040 }
 0x110   :  { %168 = vsyncpa [#allocation3], 1 }
 0x111   :  { %169 = vsyncpa [#allocation6], 1 }
 0x112   :  { %170 = vsyncpa [#allocation4], 1 }

</bundles_post_ra>
